<compile_context>
chip_gen: v6e
topology: v6e:2x2x1
jax: 0.10.0
libtpu: 0.0.40
codegen_flags: <defaults>
</compile_context>

<pallas_src>
import functools

import jax
import jax.numpy as jnp
from jax import lax
from jax.experimental import pallas as pl
from jax.experimental.pallas import tpu as pltpu


# ---------------------------------------------------------------------------
# Synthetic "env" joint layout (deterministic, mirrors MuJoCoDelta.__init__)
# ---------------------------------------------------------------------------
ADD_REGULAR = "ADD_REGULAR"
ADD_QUAT = "ADD_QUAT"

# FREE joint -> (regular, 3) + (quat, 4); two hinge joints -> (regular, 1) x 2
ADD_TYPES = [(ADD_REGULAR, 3), (ADD_QUAT, 4), (ADD_REGULAR, 1), (ADD_REGULAR, 1)]
NQ = sum(s for _, s in ADD_TYPES)  # 9
NV = 8                             # free joint (6 dof) + 2 hinges

PACK = 8  # sublanes per feature: feature f lives on packed rows [8f, 8f+8)


# ---------------------------------------------------------------------------
# Pallas kernel.  All refs are in the packed layout:
#   qpos-like:  (NQ*8, cols)   qvel-like: (NV*8, cols)
# where column c, sublane-offset s inside a feature slab holds batch element
# b = s*cols_total + (block_offset + c).  Every feature is a dense 8-sublane
# slab, so all VPU ops and stores are full-width.
# ---------------------------------------------------------------------------
def mujoco_delta_kernel(qpos_ref, qvel_ref, dqpos_ref, dqvel_ref,
                        new_qpos_ref, new_qvel_ref):
    # new_qvel = qvel + delta_qvel : one dense full-block add.
    new_qvel_ref[...] = qvel_ref[...] + dqvel_ref[...]

    # Regular segments: one dense full-block add over all of qpos.  The 32
    # quaternion rows are overwritten below; the 4 wasted adds/element are
    # cheaper than several narrow stores.
    new_qpos_ref[...] = qpos_ref[...] + dqpos_ref[...]

    out_dtype = new_qpos_ref.dtype

    def quat_components(ref, r0):
        # Four dense (8, cols) slabs, promoted to f32 for the quat math.
        return tuple(ref[r0 + c * PACK:r0 + (c + 1) * PACK, :].astype(jnp.float32)
                     for c in range(4))

    idx = 0
    for kind, size in ADD_TYPES:  # static unroll — layout is compile-time
        if kind == ADD_QUAT:
            r0 = idx * PACK
            qw, qx, qy, qz = quat_components(qpos_ref, r0)
            dw, dx, dy, dz = quat_components(dqpos_ref, r0)

            # Normalize delta quaternion: components live on separate sublane
            # slabs, so the norm is a per-element sum of squares (no cross-lane
            # reduce); rsqrt goes to the EUP slot.
            inv = lax.rsqrt(dw * dw + dx * dx + dy * dy + dz * dz)
            rw, rx, ry, rz = dw * inv, dx * inv, dy * inv, dz * inv

            # Hamilton product (w, x, y, z); each store is a dense (8, cols) slab.
            new_qpos_ref[r0 + 0 * PACK:r0 + 1 * PACK, :] = (
                qw * rw - qx * rx - qy * ry - qz * rz).astype(out_dtype)
            new_qpos_ref[r0 + 1 * PACK:r0 + 2 * PACK, :] = (
                qw * rx + qx * rw + qy * rz - qz * ry).astype(out_dtype)
            new_qpos_ref[r0 + 2 * PACK:r0 + 3 * PACK, :] = (
                qw * ry - qx * rz + qy * rw + qz * rx).astype(out_dtype)
            new_qpos_ref[r0 + 3 * PACK:r0 + 4 * PACK, :] = (
                qw * rz + qx * ry - qy * rx + qz * rw).astype(out_dtype)
        idx += size


# ---------------------------------------------------------------------------
# Packed-layout helpers (one relayout pass each; only needed if state does
# not already live in the packed layout).
# ---------------------------------------------------------------------------
def pack_state(x, pad_value=0.0):
    """(B, F) natural layout -> (F*PACK, ceil(B/PACK)) packed layout."""
    B, F = x.shape
    n_cols = -(-B // PACK)
    b_pad = n_cols * PACK
    if b_pad != B:
        x = jnp.pad(x, ((0, b_pad - B), (0, 0)), constant_values=pad_value)
    # (b_pad, F) -> (F, b_pad) -> (F*PACK, n_cols); batch b maps to
    # row f*PACK + (b // n_cols), column b % n_cols.
    return jnp.transpose(x).reshape(F * PACK, n_cols)


def unpack_state(xp, batch):
    """(F*PACK, n_cols) packed layout -> (batch, F) natural layout."""
    f8, n_cols = xp.shape
    F = f8 // PACK
    x = xp.reshape(F, PACK * n_cols)  # exact inverse of the pack reshape
    return jnp.transpose(x)[:batch]


def _tile_cols(n_cols, block_batch):
    """Packed-column tile: full extent if small, else a multiple of 128 lanes."""
    tb8 = max(1, block_batch // PACK)
    if tb8 >= n_cols:
        return n_cols                     # single full-extent block (always legal)
    return max(128, (tb8 // 128) * 128)   # lane-aligned; partial last block is masked


# ---------------------------------------------------------------------------
# Fast path: operands already in packed (feature*8, batch/8) layout.
# Zero wrapper-side HBM relayout passes.
# ---------------------------------------------------------------------------
@functools.partial(jax.jit, static_argnames=("block_batch",))
def mujoco_delta_packed(qpos_p, qvel_p, dqpos_p, dqvel_p, *, block_batch=16384):
    n_cols = qpos_p.shape[1]
    assert qpos_p.shape == (NQ * PACK, n_cols)
    assert dqpos_p.shape == (NQ * PACK, n_cols)
    assert qvel_p.shape == (NV * PACK, n_cols)
    assert dqvel_p.shape == (NV * PACK, n_cols)

    tb8 = _tile_cols(n_cols, block_batch)
    grid = (pl.cdiv(n_cols, tb8),)

    spec_q = pl.BlockSpec((NQ * PACK, tb8), lambda i: (0, i))
    spec_v = pl.BlockSpec((NV * PACK, tb8), lambda i: (0, i))

    n_elems = n_cols * PACK  # padded batch size
    cost = pl.CostEstimate(
        flops=52 * n_elems,                                   # quat + regular adds
        transcendentals=n_elems,                              # one rsqrt / element
        bytes_accessed=(3 * (NQ + NV)) * 4 * n_elems,         # 34 in + 17 out words
    )

    return pl.pallas_call(
        mujoco_delta_kernel,
        out_shape=(jax.ShapeDtypeStruct((NQ * PACK, n_cols), qpos_p.dtype),
                   jax.ShapeDtypeStruct((NV * PACK, n_cols), qvel_p.dtype)),
        grid=grid,
        in_specs=[spec_q, spec_v, spec_q, spec_v],
        out_specs=(spec_q, spec_v),
        compiler_params=pltpu.CompilerParams(
            dimension_semantics=("parallel",)),   # megacore sharding on v7x
        cost_estimate=cost,
    )(qpos_p, qvel_p, dqpos_p, dqvel_p)


# ---------------------------------------------------------------------------
# Natural-layout wrapper (matches the PyTorch module's forward interface).
# For repeated rollout steps keep the state packed and call
# mujoco_delta_packed directly to avoid the relayout passes.
# ---------------------------------------------------------------------------
@functools.partial(jax.jit, static_argnames=("block_batch",))
def mujoco_delta(qpos, qvel, delta_qpos, delta_qvel, *, block_batch=16384):
    B = qpos.shape[0]
    assert qpos.shape == (B, NQ) and delta_qpos.shape == (B, NQ)
    assert qvel.shape == (B, NV) and delta_qvel.shape == (B, NV)

    qpos_p = pack_state(qpos)
    qvel_p = pack_state(qvel)
    dqpos_p = pack_state(delta_qpos, pad_value=1.0)  # keep rsqrt finite on pad rows
    dqvel_p = pack_state(delta_qvel)

    new_qpos_p, new_qvel_p = mujoco_delta_packed(
        qpos_p, qvel_p, dqpos_p, dqvel_p, block_batch=block_batch)

    return unpack_state(new_qpos_p, B), unpack_state(new_qvel_p, B)


# ---------------------------------------------------------------------------
# Pure-JAX reference (mirrors the PyTorch forward exactly, natural layout)
# ---------------------------------------------------------------------------
def _qmul_ref(q, r):
    qw, qx, qy, qz = q[..., 0:1], q[..., 1:2], q[..., 2:3], q[..., 3:4]
    rw, rx, ry, rz = r[..., 0:1], r[..., 1:2], r[..., 2:3], r[..., 3:4]
    w = qw * rw - qx * rx - qy * ry - qz * rz
    x = qw * rx + qx * rw + qy * rz - qz * ry
    y = qw * ry - qx * rz + qy * rw + qz * rx
    z = qw * rz + qx * ry - qy * rx + qz * rw
    return jnp.concatenate([w, x, y, z], axis=-1)


def mujoco_delta_ref(qpos, qvel, delta_qpos, delta_qvel):
    new_qvel = qvel + delta_qvel
    pieces = []
    idx = 0
    for kind, size in ADD_TYPES:
        qp = qpos[..., idx:idx + size]
        dq = delta_qpos[..., idx:idx + size]
        if kind == ADD_REGULAR:
            pieces.append(qp + dq)
        else:
            norm = jnp.linalg.norm(dq, axis=-1, keepdims=True)
            pieces.append(_qmul_ref(qp, dq / norm))
        idx += size
    return jnp.concatenate(pieces, axis=-1), new_qvel


if __name__ == "__main__":
    key = jax.random.PRNGKey(0)
    k1, k2, k3, k4 = jax.random.split(key, 4)
    B = 6  # small, non-multiple of 8 to exercise the pack-padding path
    qpos = jax.random.normal(k1, (B, NQ), dtype=jnp.float32)
    qvel = jax.random.normal(k2, (B, NV), dtype=jnp.float32)
    delta_qpos = jax.random.normal(k3, (B, NQ), dtype=jnp.float32)
    delta_qvel = jax.random.normal(k4, (B, NV), dtype=jnp.float32)

    new_qpos, new_qvel = mujoco_delta(qpos, qvel, delta_qpos, delta_qvel)
    jax.block_until_ready((new_qpos, new_qvel))

    ref_qpos, ref_qvel = mujoco_delta_ref(qpos, qvel, delta_qpos, delta_qvel)
    assert jnp.allclose(new_qpos, ref_qpos, atol=1e-5, rtol=1e-5)
    assert jnp.allclose(new_qvel, ref_qvel, atol=1e-5, rtol=1e-5)

    print("KERNEL_OK")
</pallas_src>

<mosaic_0001>
module attributes {stable_mosaic.version = 11 : i64} {
  func.func @mujoco_delta_kernel(%arg0: i32, %arg1: memref<72x1xf32, #tpu.memory_space<vmem>>, %arg2: memref<64x1xf32, #tpu.memory_space<vmem>>, %arg3: memref<72x1xf32, #tpu.memory_space<vmem>>, %arg4: memref<64x1xf32, #tpu.memory_space<vmem>>, %arg5: memref<72x1xf32, #tpu.memory_space<vmem>>, %arg6: memref<64x1xf32, #tpu.memory_space<vmem>>) attributes {dimension_semantics = [#tpu.dimension_semantics<parallel>], iteration_bounds = array<i64: 1>, scalar_prefetch = 0 : i64, scratch_operands = 0 : i64, tpu.core_type = #tpu.core_type<tc>, window_params = [{transform_indices = @transform_0, window_bounds = array<i64: 72, 1>}, {transform_indices = @transform_1, window_bounds = array<i64: 64, 1>}, {transform_indices = @transform_2, window_bounds = array<i64: 72, 1>}, {transform_indices = @transform_3, window_bounds = array<i64: 64, 1>}, {transform_indices = @transform_4, window_bounds = array<i64: 72, 1>}, {transform_indices = @transform_5, window_bounds = array<i64: 64, 1>}]} {
    %c0 = arith.constant 0 : index
    %c0_0 = arith.constant 0 : index
    %0 = vector.load %arg2[%c0, %c0_0] : memref<64x1xf32, #tpu.memory_space<vmem>>, vector<64x1xf32>
    %c0_1 = arith.constant 0 : index
    %c0_2 = arith.constant 0 : index
    %1 = vector.load %arg4[%c0_1, %c0_2] : memref<64x1xf32, #tpu.memory_space<vmem>>, vector<64x1xf32>
    %2 = arith.addf %0, %1 : vector<64x1xf32>
    %c0_3 = arith.constant 0 : index
    %c0_4 = arith.constant 0 : index
    %3 = vector.load %arg6[%c0_3, %c0_4] : memref<64x1xf32, #tpu.memory_space<vmem>>, vector<64x1xf32>
    tpu.vector_store %arg6[%c0_3, %c0_4], %2 {strides = array<i32>} : memref<64x1xf32, #tpu.memory_space<vmem>>, vector<64x1xf32>,
    %c0_5 = arith.constant 0 : index
    %c0_6 = arith.constant 0 : index
    %4 = vector.load %arg1[%c0_5, %c0_6] : memref<72x1xf32, #tpu.memory_space<vmem>>, vector<72x1xf32>
    %c0_7 = arith.constant 0 : index
    %c0_8 = arith.constant 0 : index
    %5 = vector.load %arg3[%c0_7, %c0_8] : memref<72x1xf32, #tpu.memory_space<vmem>>, vector<72x1xf32>
    %6 = arith.addf %4, %5 : vector<72x1xf32>
    %c0_9 = arith.constant 0 : index
    %c0_10 = arith.constant 0 : index
    %7 = vector.load %arg5[%c0_9, %c0_10] : memref<72x1xf32, #tpu.memory_space<vmem>>, vector<72x1xf32>
    tpu.vector_store %arg5[%c0_9, %c0_10], %6 {strides = array<i32>} : memref<72x1xf32, #tpu.memory_space<vmem>>, vector<72x1xf32>,
    %c24 = arith.constant 24 : index
    %c0_11 = arith.constant 0 : index
    %8 = vector.load %arg1[%c24, %c0_11] : memref<72x1xf32, #tpu.memory_space<vmem>>, vector<8x1xf32>
    %c32 = arith.constant 32 : index
    %c0_12 = arith.constant 0 : index
    %9 = vector.load %arg1[%c32, %c0_12] : memref<72x1xf32, #tpu.memory_space<vmem>>, vector<8x1xf32>
    %c40 = arith.constant 40 : index
    %c0_13 = arith.constant 0 : index
    %10 = vector.load %arg1[%c40, %c0_13] : memref<72x1xf32, #tpu.memory_space<vmem>>, vector<8x1xf32>
    %c48 = arith.constant 48 : index
    %c0_14 = arith.constant 0 : index
    %11 = vector.load %arg1[%c48, %c0_14] : memref<72x1xf32, #tpu.memory_space<vmem>>, vector<8x1xf32>
    %c24_15 = arith.constant 24 : index
    %c0_16 = arith.constant 0 : index
    %12 = vector.load %arg3[%c24_15, %c0_16] : memref<72x1xf32, #tpu.memory_space<vmem>>, vector<8x1xf32>
    %c32_17 = arith.constant 32 : index
    %c0_18 = arith.constant 0 : index
    %13 = vector.load %arg3[%c32_17, %c0_18] : memref<72x1xf32, #tpu.memory_space<vmem>>, vector<8x1xf32>
    %c40_19 = arith.constant 40 : index
    %c0_20 = arith.constant 0 : index
    %14 = vector.load %arg3[%c40_19, %c0_20] : memref<72x1xf32, #tpu.memory_space<vmem>>, vector<8x1xf32>
    %c48_21 = arith.constant 48 : index
    %c0_22 = arith.constant 0 : index
    %15 = vector.load %arg3[%c48_21, %c0_22] : memref<72x1xf32, #tpu.memory_space<vmem>>, vector<8x1xf32>
    %16 = arith.mulf %12, %12 : vector<8x1xf32>
    %17 = arith.mulf %13, %13 : vector<8x1xf32>
    %18 = arith.addf %16, %17 : vector<8x1xf32>
    %19 = arith.mulf %14, %14 : vector<8x1xf32>
    %20 = arith.addf %18, %19 : vector<8x1xf32>
    %21 = arith.mulf %15, %15 : vector<8x1xf32>
    %22 = arith.addf %20, %21 : vector<8x1xf32>
    %23 = math.rsqrt %22 : vector<8x1xf32>
    %24 = arith.mulf %12, %23 : vector<8x1xf32>
    %25 = arith.mulf %13, %23 : vector<8x1xf32>
    %26 = arith.mulf %14, %23 : vector<8x1xf32>
    %27 = arith.mulf %15, %23 : vector<8x1xf32>
    %28 = arith.mulf %8, %24 : vector<8x1xf32>
    %29 = arith.mulf %9, %25 : vector<8x1xf32>
    %30 = arith.subf %28, %29 : vector<8x1xf32>
    %31 = arith.mulf %10, %26 : vector<8x1xf32>
    %32 = arith.subf %30, %31 : vector<8x1xf32>
    %33 = arith.mulf %11, %27 : vector<8x1xf32>
    %34 = arith.subf %32, %33 : vector<8x1xf32>
    %c24_23 = arith.constant 24 : index
    %c0_24 = arith.constant 0 : index
    %35 = vector.load %arg5[%c24_23, %c0_24] : memref<72x1xf32, #tpu.memory_space<vmem>>, vector<8x1xf32>
    tpu.vector_store %arg5[%c24_23, %c0_24], %34 {strides = array<i32>} : memref<72x1xf32, #tpu.memory_space<vmem>>, vector<8x1xf32>,
    %36 = arith.mulf %8, %25 : vector<8x1xf32>
    %37 = arith.mulf %9, %24 : vector<8x1xf32>
    %38 = arith.addf %36, %37 : vector<8x1xf32>
    %39 = arith.mulf %10, %27 : vector<8x1xf32>
    %40 = arith.addf %38, %39 : vector<8x1xf32>
    %41 = arith.mulf %11, %26 : vector<8x1xf32>
    %42 = arith.subf %40, %41 : vector<8x1xf32>
    %c32_25 = arith.constant 32 : index
    %c0_26 = arith.constant 0 : index
    %43 = vector.load %arg5[%c32_25, %c0_26] : memref<72x1xf32, #tpu.memory_space<vmem>>, vector<8x1xf32>
    tpu.vector_store %arg5[%c32_25, %c0_26], %42 {strides = array<i32>} : memref<72x1xf32, #tpu.memory_space<vmem>>, vector<8x1xf32>,
    %44 = arith.mulf %8, %26 : vector<8x1xf32>
    %45 = arith.mulf %9, %27 : vector<8x1xf32>
    %46 = arith.subf %44, %45 : vector<8x1xf32>
    %47 = arith.mulf %10, %24 : vector<8x1xf32>
    %48 = arith.addf %46, %47 : vector<8x1xf32>
    %49 = arith.mulf %11, %25 : vector<8x1xf32>
    %50 = arith.addf %48, %49 : vector<8x1xf32>
    %c40_27 = arith.constant 40 : index
    %c0_28 = arith.constant 0 : index
    %51 = vector.load %arg5[%c40_27, %c0_28] : memref<72x1xf32, #tpu.memory_space<vmem>>, vector<8x1xf32>
    tpu.vector_store %arg5[%c40_27, %c0_28], %50 {strides = array<i32>} : memref<72x1xf32, #tpu.memory_space<vmem>>, vector<8x1xf32>,
    %52 = arith.mulf %8, %27 : vector<8x1xf32>
    %53 = arith.mulf %9, %26 : vector<8x1xf32>
    %54 = arith.addf %52, %53 : vector<8x1xf32>
    %55 = arith.mulf %10, %25 : vector<8x1xf32>
    %56 = arith.subf %54, %55 : vector<8x1xf32>
    %57 = arith.mulf %11, %24 : vector<8x1xf32>
    %58 = arith.addf %56, %57 : vector<8x1xf32>
    %c48_29 = arith.constant 48 : index
    %c0_30 = arith.constant 0 : index
    %59 = vector.load %arg5[%c48_29, %c0_30] : memref<72x1xf32, #tpu.memory_space<vmem>>, vector<8x1xf32>
    tpu.vector_store %arg5[%c48_29, %c0_30], %58 {strides = array<i32>} : memref<72x1xf32, #tpu.memory_space<vmem>>, vector<8x1xf32>,
    return
  }
  func.func @transform_0(%arg0: i32) -> (i32, i32) {
    %c0_i32 = arith.constant 0 : i32
    %c0_i32_0 = arith.constant 0 : i32
    return %c0_i32, %arg0 : i32, i32
  }
  func.func @transform_1(%arg0: i32) -> (i32, i32) {
    %c0_i32 = arith.constant 0 : i32
    %c0_i32_0 = arith.constant 0 : i32
    return %c0_i32, %arg0 : i32, i32
  }
  func.func @transform_2(%arg0: i32) -> (i32, i32) {
    %c0_i32 = arith.constant 0 : i32
    %c0_i32_0 = arith.constant 0 : i32
    return %c0_i32, %arg0 : i32, i32
  }
  func.func @transform_3(%arg0: i32) -> (i32, i32) {
    %c0_i32 = arith.constant 0 : i32
    %c0_i32_0 = arith.constant 0 : i32
    return %c0_i32, %arg0 : i32, i32
  }
  func.func @transform_4(%arg0: i32) -> (i32, i32) {
    %c0_i32 = arith.constant 0 : i32
    %c0_i32_0 = arith.constant 0 : i32
    return %c0_i32, %arg0 : i32, i32
  }
  func.func @transform_5(%arg0: i32) -> (i32, i32) {
    %c0_i32 = arith.constant 0 : i32
    %c0_i32_0 = arith.constant 0 : i32
    return %c0_i32, %arg0 : i32, i32
  }
}

</mosaic_0001>

<bundles_post_ra>
// kernel: mujoco_delta_packed.1
= control target key start
LH: loop header
LB: loop body
LE: loop exit
PB: predicated region body
PF: predicated region fallthrough
CT: control target
= control target key end

     0   :  { %vm43_vm0 = vcmask 7168   ;;  %s418_s0 = inlined_call_operand.vmem [shape: f32[72,1], index: 0, kind: input, shape index: {}]   ;;  %s419_s2 = inlined_call_operand.vmem [shape: f32[72,1], index: 2, kind: input, shape index: {}]   ;;  %s420_s1 = inlined_call_operand.vmem [shape: f32[64,1], index: 1, kind: input, shape index: {}]   ;;  %s421_s4 = inlined_call_operand.vmem [shape: f32[72,1], index: 4, kind: output, shape index: {0}]   ;;  %s422_s3 = inlined_call_operand.vmem [shape: f32[64,1], index: 3, kind: input, shape index: {}]   ;;  %s423_s5 = inlined_call_operand.vmem [shape: f32[64,1], index: 5, kind: output, shape index: {1}]  }
   0x1   :  { %v183_v0 = vld [vmem:[%s418_s0 + $0x18] sm:$0xff]  ;;  %v193_v2 = vld [vmem:[%s418_s0 + $0x20] sm:$0xff]  ;;  %v205_v5 = vld [vmem:[%s418_s0 + $0x28] sm:$0xff] }
   0x2   :  { %v188_v1 = vld [vmem:[%s419_s2 + $0x18] sm:$0xff]  ;;  %v200_v4 = vld [vmem:[%s419_s2 + $0x20] sm:$0xff]  ;;  %v210_v6 = vld [vmem:[%s419_s2 + $0x28] sm:$0xff] }
   0x3   :  { %v73_v3 = vadd.f32 %v188_v1, %v183_v0  ;;  %v96_v7 = vmul.f32 %v188_v1, %v188_v1  ;;  %v74_v8 = vadd.f32 %v200_v4, %v193_v2  ;;  %v75_v9 = vadd.f32 %v210_v6, %v205_v5  ;;  %v221_v10 = vld [vmem:[%s418_s0 + $0x30] sm:$0xff]  ;;  %v19_v12 = vld [vmem:[%s420_s1] sm:$0xff]  ;;  %v20_v17 = vld [vmem:[%s420_s1 + $0x8] sm:$0xff] }
   0x4   :  { %v226_v11 = vld [vmem:[%s419_s2 + $0x30] sm:$0xff]  ;;  %v97_v13 = vmul.f32 %v200_v4, %v200_v4  ;;  %v99_v14 = vmul.f32 %v210_v6, %v210_v6  ;;  %v27_v16 = vld [vmem:[%s422_s3] sm:$0xff]  ;;  %v28_v18 = vld [vmem:[%s422_s3 + $0x8] sm:$0xff] }
   0x5   :  { %82 = vst.msk [vmem:[%s421_s4 + $0x18] sm:$0xff] %vm43_vm0, %v73_v3  ;;  %v76_v15 = vadd.f32 %v226_v11, %v221_v10  ;;  %83 = vst.msk [vmem:[%s421_s4 + $0x20] sm:$0xff] %vm43_vm0, %v74_v8  ;;  %v35_v19 = vadd.f32 %v27_v16, %v19_v12  ;;  %v36_v20 = vadd.f32 %v28_v18, %v20_v17  ;;  %v21_v21 = vld [vmem:[%s420_s1 + $0x10] sm:$0xff]  ;;  %v22_v23 = vld [vmem:[%s420_s1 + $0x18] sm:$0xff] }
   0x6   :  { %84 = vst.msk [vmem:[%s421_s4 + $0x28] sm:$0xff] %vm43_vm0, %v75_v9  ;;  %v29_v22 = vld [vmem:[%s422_s3 + $0x10] sm:$0xff]  ;;  %v98_v24 = vadd.f32 %v97_v13, %v96_v7  ;;  %v101_v25 = vmul.f32 %v226_v11, %v226_v11  ;;  %v30_v27 = vld [vmem:[%s422_s3 + $0x18] sm:$0xff]  ;;  %v23_v28 = vld [vmem:[%s420_s1 + $0x20] sm:$0xff] }
   0x7   :  { %85 = vst.msk [vmem:[%s421_s4 + $0x30] sm:$0xff] %vm43_vm0, %v76_v15  ;;  %v37_v26 = vadd.f32 %v29_v22, %v21_v21  ;;  %v31_v29 = vld [vmem:[%s422_s3 + $0x20] sm:$0xff]  ;;  %44 = vst.msk [vmem:[%s423_s5] sm:$0xff] %vm43_vm0, %v35_v19  ;;  %v38_v30 = vadd.f32 %v30_v27, %v22_v23  ;;  %v24_v32 = vld [vmem:[%s420_s1 + $0x28] sm:$0xff] }
   0x8   :  { %45 = vst.msk [vmem:[%s423_s5 + $0x8] sm:$0xff] %vm43_vm0, %v36_v20  ;;  %v39_v31 = vadd.f32 %v31_v29, %v23_v28  ;;  %v32_v33 = vld [vmem:[%s422_s3 + $0x28] sm:$0xff]  ;;  %v25_v34 = vld [vmem:[%s420_s1 + $0x30] sm:$0xff]  ;;  %v100_v35 = vadd.f32 %v99_v14, %v98_v24  ;;  %v26_v38 = vld [vmem:[%s420_s1 + $0x38] sm:$0xff] }
   0x9   :  { %46 = vst.msk [vmem:[%s423_s5 + $0x10] sm:$0xff] %vm43_vm0, %v37_v26  ;;  %v40_v36 = vadd.f32 %v32_v33, %v24_v32  ;;  %v33_v37 = vld [vmem:[%s422_s3 + $0x30] sm:$0xff]  ;;  %v34_v39 = vld [vmem:[%s422_s3 + $0x38] sm:$0xff]  ;;  %47 = vst.msk [vmem:[%s423_s5 + $0x18] sm:$0xff] %vm43_vm0, %v38_v30 }
   0xa   :  { %48 = vst.msk [vmem:[%s423_s5 + $0x20] sm:$0xff] %vm43_vm0, %v39_v31  ;;  %v41_v40 = vadd.f32 %v33_v37, %v25_v34  ;;  %v42_v41 = vadd.f32 %v34_v39, %v26_v38  ;;  %v52_v42 = vld [vmem:[%s418_s0] sm:$0xff]  ;;  %v53_v44 = vld [vmem:[%s418_s0 + $0x8] sm:$0xff]  ;;  %v102_v45 = vadd.f32 %v101_v25, %v100_v35  ;;  %v54_v48 = vld [vmem:[%s418_s0 + $0x10] sm:$0xff] }
   0xb   :  { %v61_v43 = vld [vmem:[%s419_s2] sm:$0xff]  ;;  %49 = vst.msk [vmem:[%s423_s5 + $0x28] sm:$0xff] %vm43_vm0, %v40_v36  ;;  %v62_v47 = vld [vmem:[%s419_s2 + $0x8] sm:$0xff]  ;;  %v63_v49 = vld [vmem:[%s419_s2 + $0x10] sm:$0xff] }
   0xc   :  { %v70_v46 = vadd.f32 %v61_v43, %v52_v42  ;;  %50 = vst.msk [vmem:[%s423_s5 + $0x30] sm:$0xff] %vm43_vm0, %v41_v40  ;;  %51 = vst.msk [vmem:[%s423_s5 + $0x38] sm:$0xff] %vm43_vm0, %v42_v41  ;;  %v71_v50 = vadd.f32 %v62_v47, %v53_v44  ;;  %v72_v51 = vadd.f32 %v63_v49, %v54_v48  ;;  %v59_v52 = vld [vmem:[%s418_s0 + $0x38] sm:$0xff]  ;;  %v60_v54 = vld [vmem:[%s418_s0 + $0x40] sm:$0xff]  ;;  %148 = vrsqrt.f32 %v102_v45 }
   0xd   :  { %v68_v53 = vld [vmem:[%s419_s2 + $0x38] sm:$0xff]  ;;  %v69_v56 = vld [vmem:[%s419_s2 + $0x40] sm:$0xff] }
   0xe   :  { %79 = vst.msk [vmem:[%s421_s4] sm:$0xff] %vm43_vm0, %v70_v46  ;;  %v77_v55 = vadd.f32 %v68_v53, %v59_v52  ;;  %80 = vst.msk [vmem:[%s421_s4 + $0x8] sm:$0xff] %vm43_vm0, %v71_v50  ;;  %v78_v57 = vadd.f32 %v69_v56, %v60_v54 }
   0xf   :  { %81 = vst.msk [vmem:[%s421_s4 + $0x10] sm:$0xff] %vm43_vm0, %v72_v51 }
  0x10   :  { %86 = vst.msk [vmem:[%s421_s4 + $0x38] sm:$0xff] %vm43_vm0, %v77_v55  ;;  %87 = vst.msk [vmem:[%s421_s4 + $0x40] sm:$0xff] %vm43_vm0, %v78_v57 }
  0x19   :  { %v149_v58 = vpop.eup %148 }
  0x1a   :  { %v104_v59 = vmul.f32 %v149_v58, %v188_v1  ;;  %v105_v60 = vmul.f32 %v149_v58, %v200_v4  ;;  %v106_v61 = vmul.f32 %v149_v58, %v210_v6  ;;  %v107_v62 = vmul.f32 %v149_v58, %v226_v11 }
  0x1c   :  { %v108_v63 = vmul.f32 %v104_v59, %v183_v0  ;;  %v109_v3 = vmul.f32 %v105_v60, %v193_v2  ;;  %v111_v7 = vmul.f32 %v106_v61, %v205_v5  ;;  %v113_v8 = vmul.f32 %v107_v62, %v221_v10 }
  0x1d   :  { %v116_v9 = vmul.f32 %v105_v60, %v183_v0  ;;  %v117_v12 = vmul.f32 %v104_v59, %v193_v2  ;;  %v119_v1 = vmul.f32 %v107_v62, %v205_v5  ;;  %v124_v4 = vmul.f32 %v106_v61, %v183_v0 }
  0x1e   :  { %v110_v13 = vsub.f32 %v108_v63, %v109_v3  ;;  %v125_v6 = vmul.f32 %v107_v62, %v193_v2  ;;  %v127_v11 = vmul.f32 %v104_v59, %v205_v5  ;;  %v121_v15 = vmul.f32 %v106_v61, %v221_v10 }
  0x1f   :  { %v118_v14 = vadd.f32 %v117_v12, %v116_v9  ;;  %v132_v16 = vmul.f32 %v107_v62, %v183_v0  ;;  %v133_v17 = vmul.f32 %v106_v61, %v193_v2  ;;  %v129_v20 = vmul.f32 %v105_v60, %v221_v10 }
  0x20   :  { %v112_v18 = vsub.f32 %v110_v13, %v111_v7  ;;  %v126_v19 = vsub.f32 %v124_v4, %v125_v6  ;;  %v135_v21 = vmul.f32 %v105_v60, %v205_v5  ;;  %v137_v24 = vmul.f32 %v104_v59, %v221_v10 }
  0x21   :  { %v120_v22 = vadd.f32 %v119_v1, %v118_v14  ;;  %v134_v23 = vadd.f32 %v133_v17, %v132_v16 }
  0x22   :  { %v114_v25 = vsub.f32 %v112_v18, %v113_v8  ;;  %v128_v26 = vadd.f32 %v127_v11, %v126_v19 }
  0x23   :  { %v122_v27 = vsub.f32 %v120_v22, %v121_v15  ;;  %v136_v28 = vsub.f32 %v134_v23, %v135_v21 }
  0x24   :  { %115 = vst.msk [vmem:[%s421_s4 + $0x18] sm:$0xff] %vm43_vm0, %v114_v25  ;;  %v130_v0 = vadd.f32 %v129_v20, %v128_v26 }
  0x25   :  { %123 = vst.msk [vmem:[%s421_s4 + $0x20] sm:$0xff] %vm43_vm0, %v122_v27  ;;  %v138_v2 = vadd.f32 %v137_v24, %v136_v28 }
  0x26   :  { %131 = vst.msk [vmem:[%s421_s4 + $0x28] sm:$0xff] %vm43_vm0, %v130_v0 }
  0x27   :  { %139 = vst.msk [vmem:[%s421_s4 + $0x30] sm:$0xff] %vm43_vm0, %v138_v2 }

</bundles_post_ra>
